<compile_context>
chip_gen: v5e
topology: v5e:2x2
jax: 0.10.0
libtpu: 0.0.40
codegen_flags: <defaults>
</compile_context>

<pallas_src>
import jax
import jax.numpy as jnp
from jax.experimental import pallas as pl
from jax.experimental.pallas import tpu as pltpu

_TB_MAX = 2048   # max batch-tile rows (multiple of 8); footprint stays < 2 MiB


def _round_up(x, m):
    return ((x + m - 1) // m) * m


def _pick_tiles(batch):
    """Balanced batch tiles: tb multiple of 8, tb <= ~_TB_MAX.

    For batch >= 16 force at least 2 (even) tiles so v7x's second TensorCore
    gets work via the "parallel" grid axis; harmless on v5e/v6e.
    """
    n = pl.cdiv(batch, _TB_MAX)
    if batch >= 16:
        n = max(n, 2)
        if n % 2:
            n += 1
    tb = _round_up(pl.cdiv(batch, n), 8)
    num_tiles = pl.cdiv(batch, tb)
    return tb, num_tiles


def _mlp_kernel(obs_ref, act_ref,
                w1_ref, b1_ref, w2_ref, b2_ref, w3_ref, b3_ref,
                o_ref, x_scratch):
    obs_dim = obs_ref.shape[1]

    # Fused concat: stage [obs | action] into one VMEM tile (masked lane
    # stores ride spare vst slots), so layer 1 is a single MXU pass.
    x_scratch[:, :obs_dim] = obs_ref[...]
    x_scratch[:, obs_dim:] = act_ref[...]
    x = x_scratch[...].astype(jnp.bfloat16)

    # Layer 1: Linear(input_dim, 64) + ReLU   (bf16 operands, f32 accumulate)
    h1 = jnp.dot(x, w1_ref[...], preferred_element_type=jnp.float32) + b1_ref[...]
    h1 = jnp.maximum(h1, 0.0)

    # Layer 2: Linear(64, 32) + ReLU
    h2 = (jnp.dot(h1.astype(jnp.bfloat16), w2_ref[...],
                  preferred_element_type=jnp.float32) + b2_ref[...])
    h2 = jnp.maximum(h2, 0.0)

    # Layer 3: Linear(32, out_dim), no activation.  Full-dim (masked) store —
    # only B*out_dim*4 bytes of output ever touch HBM.
    o_ref[...] = (jnp.dot(h2.astype(jnp.bfloat16), w3_ref[...],
                          preferred_element_type=jnp.float32)
                  + b3_ref[...]).astype(o_ref.dtype)


@jax.jit
def distribution_model_forward(obs, action, params):
    """Forward pass of DistributionModelLearner.

    obs:    [B, obs_dim]  float32
    action: [B, act_dim]  float32
    params: dict with w1 [D,64], b1 [1,64], w2 [64,32], b2 [1,32],
            w3 [32,O], b3 [1,O]   where D = obs_dim + act_dim
    returns [B, O] float32
    """
    batch, obs_dim = obs.shape
    act_dim = action.shape[1]
    in_dim = obs_dim + act_dim
    out_dim = params["w3"].shape[1]

    # bf16 weights (tiny, VMEM-resident); biases stay f32 (added post-accum).
    w1 = params["w1"].astype(jnp.bfloat16)
    w2 = params["w2"].astype(jnp.bfloat16)
    w3 = params["w3"].astype(jnp.bfloat16)
    b1, b2, b3 = params["b1"], params["b2"], params["b3"]

    tb, num_tiles = _pick_tiles(batch)

    # Weights / biases: full-array resident blocks (constant index_map).
    resident = lambda a: pl.BlockSpec(a.shape, lambda i: (0,) * a.ndim)

    out = pl.pallas_call(
        _mlp_kernel,
        out_shape=jax.ShapeDtypeStruct((batch, out_dim), jnp.float32),
        grid=(num_tiles,),
        in_specs=[
            pl.BlockSpec((tb, obs_dim), lambda i: (i, 0)),   # obs tile
            pl.BlockSpec((tb, act_dim), lambda i: (i, 0)),   # action tile
            resident(w1), resident(b1),
            resident(w2), resident(b2),
            resident(w3), resident(b3),
        ],
        out_specs=pl.BlockSpec((tb, out_dim), lambda i: (i, 0)),
        scratch_shapes=[pltpu.VMEM((tb, in_dim), jnp.float32)],
        compiler_params=pltpu.CompilerParams(
            dimension_semantics=("parallel",)),
    )(obs, action, w1, b1, w2, b2, w3, b3)

    return out


def init_params(key, input_dim, output_dim):
    """Deterministic init mimicking torch.nn.Linear default (U[-1/sqrt(fan_in), +])."""
    dims = [(input_dim, 64), (64, 32), (32, output_dim)]
    params = {}
    for i, (fan_in, fan_out) in enumerate(dims, start=1):
        key, kw, kb = jax.random.split(key, 3)
        bound = 1.0 / jnp.sqrt(float(fan_in))
        params[f"w{i}"] = jax.random.uniform(
            kw, (fan_in, fan_out), jnp.float32, -bound, bound)
        params[f"b{i}"] = jax.random.uniform(
            kb, (1, fan_out), jnp.float32, -bound, bound)
    return params


if __name__ == "__main__":
    key = jax.random.PRNGKey(0)
    k_obs, k_act, k_par = jax.random.split(key, 3)

    batch = 8
    obs_dim = 12
    act_dim = 4
    input_dim = obs_dim + act_dim   # 16
    output_dim = 8

    obs = jax.random.normal(k_obs, (batch, obs_dim), jnp.float32)
    action = jax.random.normal(k_act, (batch, act_dim), jnp.float32)
    params = init_params(k_par, input_dim, output_dim)

    out = distribution_model_forward(obs, action, params)
    out = jax.block_until_ready(out)
    assert out.shape == (batch, output_dim)

    # Reference 1: same mixed-precision recipe in pure JAX (tight tolerance).
    xb = jnp.concatenate([obs, action], axis=-1).astype(jnp.bfloat16)
    r1 = jnp.maximum(jnp.dot(xb, params["w1"].astype(jnp.bfloat16),
                             preferred_element_type=jnp.float32) + params["b1"], 0.0)
    r2 = jnp.maximum(jnp.dot(r1.astype(jnp.bfloat16), params["w2"].astype(jnp.bfloat16),
                             preferred_element_type=jnp.float32) + params["b2"], 0.0)
    ref_mixed = (jnp.dot(r2.astype(jnp.bfloat16), params["w3"].astype(jnp.bfloat16),
                         preferred_element_type=jnp.float32) + params["b3"])
    assert jnp.allclose(out, ref_mixed, atol=1e-3, rtol=1e-3)

    # Reference 2: full-f32 module math (loose tolerance for bf16 compute).
    x = jnp.concatenate([obs, action], axis=-1)
    h1 = jnp.maximum(x @ params["w1"] + params["b1"], 0.0)
    h2 = jnp.maximum(h1 @ params["w2"] + params["b2"], 0.0)
    ref_f32 = h2 @ params["w3"] + params["b3"]
    assert jnp.allclose(out, ref_f32, atol=5e-2, rtol=1e-2)

    print("KERNEL_OK")
</pallas_src>

<mosaic_0001>
module attributes {stable_mosaic.version = 11 : i64} {
  func.func @_mlp_kernel(%arg0: i32, %arg1: memref<8x12xf32, #tpu.memory_space<vmem>>, %arg2: memref<8x4xf32, #tpu.memory_space<vmem>>, %arg3: memref<16x64xbf16, #tpu.memory_space<vmem>>, %arg4: memref<1x64xf32, #tpu.memory_space<vmem>>, %arg5: memref<64x32xbf16, #tpu.memory_space<vmem>>, %arg6: memref<1x32xf32, #tpu.memory_space<vmem>>, %arg7: memref<32x8xbf16, #tpu.memory_space<vmem>>, %arg8: memref<1x8xf32, #tpu.memory_space<vmem>>, %arg9: memref<8x8xf32, #tpu.memory_space<vmem>>, %arg10: memref<8x16xf32, #tpu.memory_space<vmem>>) attributes {dimension_semantics = [#tpu.dimension_semantics<parallel>], iteration_bounds = array<i64: 1>, scalar_prefetch = 0 : i64, scratch_operands = 1 : i64, tpu.core_type = #tpu.core_type<tc>, window_params = [{transform_indices = @transform_0, window_bounds = array<i64: 8, 12>}, {transform_indices = @transform_1, window_bounds = array<i64: 8, 4>}, {pipeline_mode = #tpu.pipeline_mode<synchronous>, transform_indices = @transform_2, window_bounds = array<i64: 16, 64>}, {pipeline_mode = #tpu.pipeline_mode<synchronous>, transform_indices = @transform_3, window_bounds = array<i64: 1, 64>}, {pipeline_mode = #tpu.pipeline_mode<synchronous>, transform_indices = @transform_4, window_bounds = array<i64: 64, 32>}, {pipeline_mode = #tpu.pipeline_mode<synchronous>, transform_indices = @transform_5, window_bounds = array<i64: 1, 32>}, {pipeline_mode = #tpu.pipeline_mode<synchronous>, transform_indices = @transform_6, window_bounds = array<i64: 32, 8>}, {pipeline_mode = #tpu.pipeline_mode<synchronous>, transform_indices = @transform_7, window_bounds = array<i64: 1, 8>}, {transform_indices = @transform_8, window_bounds = array<i64: 8, 8>}]} {
    %c0 = arith.constant 0 : index
    %c0_0 = arith.constant 0 : index
    %0 = vector.load %arg1[%c0, %c0_0] : memref<8x12xf32, #tpu.memory_space<vmem>>, vector<8x12xf32>
    %c0_1 = arith.constant 0 : index
    %c0_2 = arith.constant 0 : index
    %1 = vector.load %arg10[%c0_1, %c0_2] : memref<8x16xf32, #tpu.memory_space<vmem>>, vector<8x12xf32>
    tpu.vector_store %arg10[%c0_1, %c0_2], %0 {strides = array<i32>} : memref<8x16xf32, #tpu.memory_space<vmem>>, vector<8x12xf32>,
    %c0_3 = arith.constant 0 : index
    %c0_4 = arith.constant 0 : index
    %2 = vector.load %arg2[%c0_3, %c0_4] : memref<8x4xf32, #tpu.memory_space<vmem>>, vector<8x4xf32>
    %c0_5 = arith.constant 0 : index
    %c12 = arith.constant 12 : index
    %3 = vector.load %arg10[%c0_5, %c12] : memref<8x16xf32, #tpu.memory_space<vmem>>, vector<8x4xf32>
    tpu.vector_store %arg10[%c0_5, %c12], %2 {strides = array<i32>} : memref<8x16xf32, #tpu.memory_space<vmem>>, vector<8x4xf32>,
    %c0_6 = arith.constant 0 : index
    %c0_7 = arith.constant 0 : index
    %4 = vector.load %arg10[%c0_6, %c0_7] : memref<8x16xf32, #tpu.memory_space<vmem>>, vector<8x16xf32>
    %5 = arith.truncf %4 : vector<8x16xf32> to vector<8x16xbf16>
    %c0_8 = arith.constant 0 : index
    %c0_9 = arith.constant 0 : index
    %6 = vector.load %arg3[%c0_8, %c0_9] : memref<16x64xbf16, #tpu.memory_space<vmem>>, vector<16x64xbf16>
    %cst = arith.constant dense<0.000000e+00> : vector<8x64xf32>
    %7 = tpu.matmul %5, %6, %cst {dimension_numbers = #tpu.dot_dimension_numbers<[1], [0], [0], [1], [0, 0, 1, 1], [], []>} : vector<8x16xbf16>, vector<16x64xbf16>, vector<8x64xf32> -> vector<8x64xf32>
    %c0_10 = arith.constant 0 : index
    %c0_11 = arith.constant 0 : index
    %8 = vector.load %arg4[%c0_10, %c0_11] : memref<1x64xf32, #tpu.memory_space<vmem>>, vector<1x64xf32>
    %9 = vector.broadcast %8 : vector<1x64xf32> to vector<8x64xf32>
    %10 = arith.addf %7, %9 : vector<8x64xf32>
    %cst_12 = arith.constant 0.000000e+00 : f32
    %11 = vector.broadcast %cst_12 : f32 to vector<8x64xf32>
    %12 = arith.maximumf %10, %11 : vector<8x64xf32>
    %13 = arith.truncf %12 : vector<8x64xf32> to vector<8x64xbf16>
    %c0_13 = arith.constant 0 : index
    %c0_14 = arith.constant 0 : index
    %14 = vector.load %arg5[%c0_13, %c0_14] : memref<64x32xbf16, #tpu.memory_space<vmem>>, vector<64x32xbf16>
    %cst_15 = arith.constant dense<0.000000e+00> : vector<8x32xf32>
    %15 = tpu.matmul %13, %14, %cst_15 {dimension_numbers = #tpu.dot_dimension_numbers<[1], [0], [0], [1], [0, 0, 1, 1], [], []>} : vector<8x64xbf16>, vector<64x32xbf16>, vector<8x32xf32> -> vector<8x32xf32>
    %c0_16 = arith.constant 0 : index
    %c0_17 = arith.constant 0 : index
    %16 = vector.load %arg6[%c0_16, %c0_17] : memref<1x32xf32, #tpu.memory_space<vmem>>, vector<1x32xf32>
    %17 = vector.broadcast %16 : vector<1x32xf32> to vector<8x32xf32>
    %18 = arith.addf %15, %17 : vector<8x32xf32>
    %cst_18 = arith.constant 0.000000e+00 : f32
    %19 = vector.broadcast %cst_18 : f32 to vector<8x32xf32>
    %20 = arith.maximumf %18, %19 : vector<8x32xf32>
    %21 = arith.truncf %20 : vector<8x32xf32> to vector<8x32xbf16>
    %c0_19 = arith.constant 0 : index
    %c0_20 = arith.constant 0 : index
    %22 = vector.load %arg7[%c0_19, %c0_20] : memref<32x8xbf16, #tpu.memory_space<vmem>>, vector<32x8xbf16>
    %cst_21 = arith.constant dense<0.000000e+00> : vector<8x8xf32>
    %23 = tpu.matmul %21, %22, %cst_21 {dimension_numbers = #tpu.dot_dimension_numbers<[1], [0], [0], [1], [0, 0, 1, 1], [], []>} : vector<8x32xbf16>, vector<32x8xbf16>, vector<8x8xf32> -> vector<8x8xf32>
    %c0_22 = arith.constant 0 : index
    %c0_23 = arith.constant 0 : index
    %24 = vector.load %arg8[%c0_22, %c0_23] : memref<1x8xf32, #tpu.memory_space<vmem>>, vector<1x8xf32>
    %25 = vector.broadcast %24 : vector<1x8xf32> to vector<8x8xf32>
    %26 = arith.addf %23, %25 : vector<8x8xf32>
    %c0_24 = arith.constant 0 : index
    %c0_25 = arith.constant 0 : index
    %27 = vector.load %arg9[%c0_24, %c0_25] : memref<8x8xf32, #tpu.memory_space<vmem>>, vector<8x8xf32>
    tpu.vector_store %arg9[%c0_24, %c0_25], %26 {strides = array<i32>} : memref<8x8xf32, #tpu.memory_space<vmem>>, vector<8x8xf32>,
    return
  }
  func.func @transform_0(%arg0: i32) -> (i32, i32) {
    %c0_i32 = arith.constant 0 : i32
    %c0_i32_0 = arith.constant 0 : i32
    return %arg0, %c0_i32 : i32, i32
  }
  func.func @transform_1(%arg0: i32) -> (i32, i32) {
    %c0_i32 = arith.constant 0 : i32
    %c0_i32_0 = arith.constant 0 : i32
    return %arg0, %c0_i32 : i32, i32
  }
  func.func @transform_2(%arg0: i32) -> (i32, i32) {
    %c0_i32 = arith.constant 0 : i32
    %c0_i32_0 = arith.constant 0 : i32
    %c0_i32_1 = arith.constant 0 : i32
    return %c0_i32, %c0_i32_0 : i32, i32
  }
  func.func @transform_3(%arg0: i32) -> (i32, i32) {
    %c0_i32 = arith.constant 0 : i32
    %c0_i32_0 = arith.constant 0 : i32
    %c0_i32_1 = arith.constant 0 : i32
    return %c0_i32, %c0_i32_0 : i32, i32
  }
  func.func @transform_4(%arg0: i32) -> (i32, i32) {
    %c0_i32 = arith.constant 0 : i32
    %c0_i32_0 = arith.constant 0 : i32
    %c0_i32_1 = arith.constant 0 : i32
    return %c0_i32, %c0_i32_0 : i32, i32
  }
  func.func @transform_5(%arg0: i32) -> (i32, i32) {
    %c0_i32 = arith.constant 0 : i32
    %c0_i32_0 = arith.constant 0 : i32
    %c0_i32_1 = arith.constant 0 : i32
    return %c0_i32, %c0_i32_0 : i32, i32
  }
  func.func @transform_6(%arg0: i32) -> (i32, i32) {
    %c0_i32 = arith.constant 0 : i32
    %c0_i32_0 = arith.constant 0 : i32
    %c0_i32_1 = arith.constant 0 : i32
    return %c0_i32, %c0_i32_0 : i32, i32
  }
  func.func @transform_7(%arg0: i32) -> (i32, i32) {
    %c0_i32 = arith.constant 0 : i32
    %c0_i32_0 = arith.constant 0 : i32
    %c0_i32_1 = arith.constant 0 : i32
    return %c0_i32, %c0_i32_0 : i32, i32
  }
  func.func @transform_8(%arg0: i32) -> (i32, i32) {
    %c0_i32 = arith.constant 0 : i32
    %c0_i32_0 = arith.constant 0 : i32
    return %arg0, %c0_i32 : i32, i32
  }
}

</mosaic_0001>

<bundles_post_ra>
// kernel: distribution_model_forward.1
= control target key start
LH: loop header
LB: loop body
LE: loop exit
PB: predicated region body
PF: predicated region fallthrough
CT: control target
= control target key end

     0   :  { %vm32_vm0 = vcmask 97280   ;;  %s253_s9 = smov 12   ;;  %s339_s0 = inlined_call_operand.vmem [shape: f32[8,12], index: 0, kind: input, shape index: {}]   ;;  %s340_s1 = inlined_call_operand.vmem [shape: f32[8,4], index: 1, kind: input, shape index: {}]   ;;  %s341_s2 = inlined_call_operand.vmem [shape: bf16[16,64], index: 2, kind: input, shape index: {}]   ;;  %s342_s3 = inlined_call_operand.vmem [shape: f32[1,64], index: 3, kind: input, shape index: {}]   ;;  %s343_s4 = inlined_call_operand.vmem [shape: bf16[64,32], index: 4, kind: input, shape index: {}]   ;;  %s344_s5 = inlined_call_operand.vmem [shape: f32[1,32], index: 5, kind: input, shape index: {}]   ;;  %s345_s6 = inlined_call_operand.vmem [shape: bf16[32,8], index: 6, kind: input, shape index: {}]   ;;  %s346_s7 = inlined_call_operand.vmem [shape: f32[1,8], index: 7, kind: input, shape index: {}]   ;;  %s347_s8 = inlined_call_operand.hbm [shape: f32[8,8], index: 8, kind: output, shape index: {}]  }
   0x1   :  { %v34_v0 = vld [vmem:[%s340_s1] sm:$0xff] }
   0x2   :  { %v31_v1 = vld [vmem:[%s339_s0] sm:$0xff]  ;;  %36 = vrot.lane.b32.xlu0 %v34_v0, %s253_s9 }
   0x3   :  { %33 = vst.msk [vmem:[#allocation2] sm:$0xff] %vm32_vm0, %v31_v1 }
   0x4   :  { %13 = vsyncpa [#allocation4], 0  ;;  %v215_v2 = vld [vmem:[%s341_s2] sm:$0xff]  ;;  %v219_v3 = vld [vmem:[%s343_s4 + $0x18] sm:$0xff]  ;;  %vm39_vm1 = vcmask 130144   ;;  %vm55_vm2 = vcmask 130048  }
   0x5   :  { %66 = vmatpush.bf16.msra.mxu0 %v215_v2  ;;  %118 = vmatpush.bf16.msra.mxu1 %v219_v3  ;;  %v218_v4 = vld [vmem:[%s343_s4 + $0x10] sm:$0xff]  ;;  %v217_v8 = vld [vmem:[%s343_s4 + $0x8] sm:$0xff]  ;;  %v216_v9 = vld [vmem:[%s343_s4] sm:$0xff]  ;;  %vm110_vm3 = vcmask 523264   ;;  %vm149_vm4 = vcmask 261120   ;;  %s254_s25 = smov [#allocation3]  }
   0x6   :  { %v224_v10 = vld [vmem:[%s342_s3] ss:$0 sm:$0xff]  ;;  %v221_v16 = vld [vmem:[%s345_s6 + $0x8] sm:$0xff]  ;;  %s173_s26 = sshll.u32 %s254_s25, 4  ;;  %s175_s28 = sshll.u32 %s347_s8, 4  ;;  %vm166_vm5 = vcmask 64512   ;;  %s174_s26 = int_to_ptr.vmem [resolvable:$true] %s173_s26  ;;  %s176_s28 = int_to_ptr.hbm [resolvable:$true] %s175_s28 }
   0x7   :  { %159 = vmatpush.bf16.msra.mxu2 %v221_v16  ;;  %v220_v17 = vld [vmem:[%s345_s6] sm:$0xff] }
   0x8   :  { %v225_v18 = vld [vmem:[%s344_s5] ss:$0 sm:$0xff] }
   0x9   :  { %119 = vmatpush.bf16.msra.mxu1 %v218_v4  ;;  %v226_v24 = vld [vmem:[%s346_s7] ss:$0 sm:$0xff] }
   0xb   :  { %160 = vmatpush.bf16.msra.mxu2 %v220_v17 }
   0xd   :  { %120 = vmatpush.bf16.msra.mxu1 %v217_v8 }
  0x11   :  { %121 = vmatpush.bf16.msra.mxu1 %v216_v9 }
  0x74   :  { %v37_v5 = vpop.permute.xlu0 %36 }
  0x75   :  { %40 = vst.msk [vmem:[#allocation2] sm:$0xff] %vm39_vm1, %v37_v5 }
  0x7c   :  { %v41_v6 = vld [vmem:[#allocation2] sm:$0xff] }
  0x7d   :  { %v42_v7 = vpack.c.bf16 %v41_v6, %v41_v6 }
  0x7f   :  { %188 = vmatmul.msk.bf16.vlgmr.msra.gmra.mxu0 %vm55_vm2, %v42_v7 }
  0xfc   :  { %v68_v11 = vpop.f32.mrf.mxu0 }
  0xfd   :  { %v69_v12 = vadd.f32 %v224_v10, %v68_v11 }
  0xff   :  { %v72_v13 = vmax.f32 %v69_v12, 0.0 }
 0x101   :  { %v73_v14 = vpack.c.bf16 %v72_v13, %v72_v13 }
 0x103   :  { %205 = vmatmul.msk.bf16.vlgmr.msra.gmra.mxu1 %vm110_vm3, %v73_v14 }
 0x104   :  { %v70_v15 = vpop.f32.mrf.mxu0 }
 0x180   :  { %v123_v19 = vpop.f32.mrf.mxu1 }
 0x181   :  { %v124_v20 = vadd.f32 %v225_v18, %v123_v19 }
 0x183   :  { %v127_v21 = vmax.f32 %v124_v20, 0.0 }
 0x185   :  { %v128_v22 = vpack.c.bf16 %v127_v21, %v127_v21 }
 0x187   :  { %214 = vmatmul.msk.bf16.vlgmr.msra.gmra.mxu2 %vm149_vm4, %v128_v22 }
 0x188   :  { %v125_v23 = vpop.f32.mrf.mxu1 }
 0x20a   :  { %v162_v25 = vpop.f32.mrf.mxu2 }
 0x20b   :  { %v163_v26 = vadd.f32 %v226_v24, %v162_v25 }
 0x20d   :  { %167 = vst.msk [vmem:[#allocation3] sm:$0xff] %vm166_vm5, %v163_v26 }
 0x20e   :  { %178 = dma.vmem_to_hbm [thread:$0]  %s174_s26, 128, %s176_s28, [#allocation4]  }
 0x212   :  { %v164_v27 = vpop.f32.mrf.mxu2 }
 0x213   :  { %251 = dma.done.wait [#allocation4], 128  }
 0x214   :  { %252 = vsyncadd [#allocation4], 4294967168 }
 0x215   :  { %183 = vsyncpa [#allocation4], 1 }

</bundles_post_ra>
